<compile_context>
chip_gen: v5e
topology: v5e:2x2
jax: 0.10.0
libtpu: 0.0.40
codegen_flags: <defaults>
</compile_context>

<pallas_src>
import jax
import jax.numpy as jnp
from jax.experimental import pallas as pl
from jax.experimental.pallas import tpu as pltpu


# Rows of the packed small-parameter array (biases / LayerNorm params / v_out).
(R_BG1, R_BG2, R_G0, R_BE0,
 R_B1, R_G1, R_BE1, R_B2, R_G2, R_BE2,
 R_BGRU, R_GR, R_BER, R_WV, R_BV) = range(15)
N_ROWS = 15


# ----------------------------- Pallas kernel ------------------------------ #
def critic_kernel(
    x_ref, adj_ref, h0_ref, mask_ref, p_ref,
    wslab_ref,                             # [Fp + 3*H, H] stacked GCN/MLP weights
    wgru_ref,                              # [2H, 4H] fused GRU weight
    val_ref, hout_ref,                     # outputs: [1,B] values, [B,H] new state
):
    f32 = jnp.float32
    x = x_ref[...]                         # [B, N, Fp]   (feature dim zero-padded)
    adj = adj_ref[...]                     # [B, N, N]
    B, N, Fp = x.shape
    H = h0_ref.shape[1]
    Hg = wslab_ref.shape[1]
    pp = p_ref[...]                        # [N_ROWS, 4H] packed small params

    def prow(i, n):                        # static slice -> [1, n] (free)
        return pp[i:i + 1, :n]

    # Weight slab: one DMA, static 8-aligned sublane slices.
    ws = wslab_ref[...]
    o = 0
    wg1 = ws[o:o + Fp, :]; o += Fp         # [Fp, Hg]  (rows >= F are zero)
    wg2 = ws[o:o + Hg, :]; o += Hg         # [Hg, Hg]
    w1 = ws[o:o + Hg, :]; o += Hg          # [Hg, H]
    w2 = ws[o:o + H, :]                    # [H, H]

    # ------------- GNN: self-loops + row-normalised 2-layer GCN -----------
    row = jax.lax.broadcasted_iota(jnp.int32, (N, N), 0)
    col = jax.lax.broadcasted_iota(jnp.int32, (N, N), 1)
    eye = (row == col).astype(f32)
    a = adj + eye[None, :, :]
    deg = jnp.sum(a, axis=-1, keepdims=True)              # [B, N, 1]
    a = a * pl.reciprocal(deg, approx=True)                # EUP slot, frees VALU

    def aggregate(h):
        # m[b,i,:] = sum_j a[b,i,j] * h[b,j,:].  N is tiny (8): unrolled VPU
        # broadcast multiply with a balanced pairwise-add tree (depth log2 N).
        terms = [a[:, :, j:j + 1] * h[:, j:j + 1, :] for j in range(N)]
        while len(terms) > 1:
            nxt = [terms[i] + terms[i + 1] for i in range(0, len(terms) - 1, 2)]
            if len(terms) % 2:
                nxt.append(terms[-1])
            terms = nxt
        return terms[0]                                    # [B, N, Fin]

    def gcn(h, w, b_row):
        m = aggregate(h)
        fin = m.shape[-1]
        fout = w.shape[1]
        # Fold B*N into the matmul M dimension: one MXU push per layer.
        z = jnp.dot(m.reshape(B * N, fin), w,
                    preferred_element_type=f32) + b_row
        return jnp.maximum(z, 0.0).reshape(B, N, fout)

    h1 = gcn(x, wg1, prow(R_BG1, Hg))                      # [B, N, Hg]
    h2 = gcn(h1, wg2, prow(R_BG2, Hg))                     # [B, N, Hg]
    feat = jnp.mean(h2, axis=1)                            # readout -> [B, Hg]

    def layer_norm(v, g, b):
        # Two independent lane reductions (mean, mean-of-squares) so they can
        # dual-issue on the 2 XLUs; var = E[x^2] - mean^2.
        mu = jnp.mean(v, axis=-1, keepdims=True)
        ms = jnp.mean(v * v, axis=-1, keepdims=True)
        var = ms - mu * mu
        return (v - mu) * jax.lax.rsqrt(var + 1e-5) * g + b

    # ------------- MLPBase: feature LN -> 2x (Linear + ReLU + LN) ---------
    feat = layer_norm(feat, prow(R_G0, Hg), prow(R_BE0, Hg))
    feat = jnp.maximum(
        jnp.dot(feat, w1, preferred_element_type=f32) + prow(R_B1, H), 0.0)
    feat = layer_norm(feat, prow(R_G1, H), prow(R_BE1, H))
    feat = jnp.maximum(
        jnp.dot(feat, w2, preferred_element_type=f32) + prow(R_B2, H), 0.0)
    feat = layer_norm(feat, prow(R_G2, H), prow(R_BE2, H))

    # ------------- RNNLayer: masked single-step GRU + LayerNorm -----------
    # One fused MXU push: [B,2H] @ [2H,4H].  Column blocks of the fused weight:
    #   [W_ir|W_hr]  [W_iz|W_hz]  [W_in|0]  [0|W_hn]
    # so g = [gir+ghr | giz+ghz | gin | ghn].  Bias row is packed the same way.
    hprev = h0_ref[...] * mask_ref[...]                    # [B,H] * [B,1]
    lhs = jnp.concatenate([feat, hprev], axis=-1)          # [B, 2H]
    g = jnp.dot(lhs, wgru_ref[...],
                preferred_element_type=f32) + prow(R_BGRU, 4 * H)   # [B, 4H]
    rz = jax.nn.sigmoid(g[:, 0:2 * H])
    r = rz[:, 0:H]
    zg = rz[:, H:2 * H]
    n = jnp.tanh(g[:, 2 * H:3 * H] + r * g[:, 3 * H:4 * H])
    hnew = (1.0 - zg) * n + zg * hprev
    hout_ref[...] = hnew
    feat = layer_norm(hnew, prow(R_GR, H), prow(R_BER, H))

    # ------------- v_out: Linear(H, 1), lane-dense [1, B] output ----------
    wv = prow(R_WV, H)                                     # [1, H]
    bv = pp[R_BV:R_BV + 1, 0:1]                            # [1, 1]
    val_row = jax.lax.dot_general(                         # contract H: [1,H]x[B,H]->[1,B]
        wv, feat, (((1,), (1,)), ((), ())), preferred_element_type=f32)
    val_ref[...] = val_row + bv


# ------------------------------- wrapper ----------------------------------- #
def aps_gr_critic_forward(x, adj, rnn_states, masks, params):
    """x: [B,N,F], adj: [B,N,N], rnn_states: [B,1,H], masks: [B,1].
    Returns (values [B,1], rnn_states [B,1,H])."""
    B, N, F = x.shape
    H = rnn_states.shape[-1]
    Fp = ((F + 7) // 8) * 8
    x_p = jnp.pad(x.astype(jnp.float32), ((0, 0), (0, 0), (0, Fp - F)))
    h0 = rnn_states.reshape(B, H).astype(jnp.float32)

    w_slab, w_gru, packed = params

    inputs = (x_p, adj.astype(jnp.float32), h0, masks.astype(jnp.float32),
              packed, w_slab, w_gru)

    vmem = pl.BlockSpec(memory_space=pltpu.MemorySpace.VMEM)
    values_row, hnew = pl.pallas_call(
        critic_kernel,
        out_shape=(jax.ShapeDtypeStruct((1, B), jnp.float32),   # lane-dense values
                   jax.ShapeDtypeStruct((B, H), jnp.float32)),
        in_specs=[vmem] * len(inputs),
        out_specs=(vmem, vmem),
        input_output_aliases={2: 1},       # h0 buffer reused for the new state
    )(*inputs)
    return values_row.reshape(B, 1), hnew.reshape(B, 1, H)


# ---------------------------- parameter init -------------------------------- #
def make_params(key, F, Hg, H):
    # Weight slab packing assumes gnn_out_dim == hidden_size (true in this config).
    assert Hg == H
    ks = jax.random.split(key, 11)

    def w(k, shape, fan_in):
        return jax.random.normal(k, shape, jnp.float32) * jnp.sqrt(1.0 / fan_in)

    Fp = ((F + 7) // 8) * 8
    # GCN layer 1 weight, zero-padded to Fp rows (matches zero-padded x features).
    wg1 = jnp.zeros((Fp, Hg), jnp.float32).at[:F, :].set(w(ks[0], (F, Hg), F))
    wg2 = w(ks[1], (Hg, Hg), Hg)
    w1 = w(ks[2], (Hg, H), Hg)
    w2 = w(ks[3], (H, H), H)
    w_slab = jnp.concatenate([wg1, wg2, w1, w2], axis=0)    # [Fp + 3H, H]

    # GRU per-gate weights (PyTorch GRU semantics: r|z|n, n uses r * (W_hn h + b_hn)).
    wir, wiz, win_ = (w(ks[i], (H, H), H) for i in (4, 5, 6))
    whr, whz, whn = (w(ks[i], (H, H), H) for i in (7, 8, 9))
    zer = jnp.zeros((H, H), jnp.float32)
    w_gru = jnp.concatenate([
        jnp.concatenate([wir, wiz, win_, zer], axis=1),     # input rows
        jnp.concatenate([whr, whz, zer, whn], axis=1),      # hidden rows
    ], axis=0)                                              # [2H, 4H]

    n_max = 4 * H

    def row(v):
        v = jnp.asarray(v, jnp.float32).reshape(-1)
        return jnp.pad(v, (0, n_max - v.shape[0]))

    zeros, ones = jnp.zeros, jnp.ones
    # Fused GRU bias row: [b_ir+b_hr | b_iz+b_hz | b_in | b_hn] (all zero at init).
    b_gru = zeros((4 * H,))
    rows = [
        zeros((Hg,)), zeros((Hg,)),                 # R_BG1, R_BG2
        ones((Hg,)), zeros((Hg,)),                  # R_G0,  R_BE0 (feature LN)
        zeros((H,)), ones((H,)), zeros((H,)),       # R_B1,  R_G1, R_BE1
        zeros((H,)), ones((H,)), zeros((H,)),       # R_B2,  R_G2, R_BE2
        b_gru,                                      # R_BGRU
        ones((H,)), zeros((H,)),                    # R_GR,  R_BER (post-GRU LN)
        w(ks[10], (H,), H),                         # R_WV  (v_out weight row)
        zeros((1,)),                                # R_BV  (v_out bias)
    ]
    packed = jnp.stack([row(r) for r in rows]).astype(jnp.float32)  # [15, 4H]
    return (w_slab, w_gru, packed)


# --------------------------------- main ------------------------------------- #
if __name__ == "__main__":
    B, N, F, H = 2, 8, 6, 32          # batch, nodes, node-feat dim, hidden_size
    Hg = H                            # gnn_out_dim

    key = jax.random.PRNGKey(0)
    kx, ka, kh, kp = jax.random.split(key, 4)

    x = jax.random.normal(kx, (B, N, F), jnp.float32)
    adj_raw = (jax.random.uniform(ka, (B, N, N)) > 0.5).astype(jnp.float32)
    adj = jnp.maximum(adj_raw, jnp.transpose(adj_raw, (0, 2, 1)))  # symmetric
    rnn_states = jax.random.normal(kh, (B, 1, H), jnp.float32)
    masks = jnp.ones((B, 1), jnp.float32)

    params = make_params(kp, F, Hg, H)

    fwd = jax.jit(aps_gr_critic_forward)
    values, new_rnn_states = fwd(x, adj, rnn_states, masks, params)
    jax.block_until_ready((values, new_rnn_states))

    assert values.shape == (B, 1)
    assert new_rnn_states.shape == (B, 1, H)
    print("KERNEL_OK")
</pallas_src>

<mosaic_0001>
module attributes {stable_mosaic.version = 11 : i64} {
  func.func @critic_kernel(%arg0: memref<2x8x8xf32, #tpu.memory_space<vmem>>, %arg1: memref<2x8x8xf32, #tpu.memory_space<vmem>>, %arg2: memref<2x32xf32, #tpu.memory_space<vmem>>, %arg3: memref<2x1xf32, #tpu.memory_space<vmem>>, %arg4: memref<15x128xf32, #tpu.memory_space<vmem>>, %arg5: memref<104x32xf32, #tpu.memory_space<vmem>>, %arg6: memref<64x128xf32, #tpu.memory_space<vmem>>, %arg7: memref<1x2xf32, #tpu.memory_space<vmem>>, %arg8: memref<2x32xf32, #tpu.memory_space<vmem>>) attributes {dimension_semantics = [], scalar_prefetch = 0 : i64, scratch_operands = 0 : i64, tpu.core_type = #tpu.core_type<tc>} {
    %c0 = arith.constant 0 : index
    %c0_0 = arith.constant 0 : index
    %c0_1 = arith.constant 0 : index
    %0 = vector.load %arg0[%c0, %c0_0, %c0_1] : memref<2x8x8xf32, #tpu.memory_space<vmem>>, vector<2x8x8xf32>
    %c0_2 = arith.constant 0 : index
    %c0_3 = arith.constant 0 : index
    %c0_4 = arith.constant 0 : index
    %1 = vector.load %arg1[%c0_2, %c0_3, %c0_4] : memref<2x8x8xf32, #tpu.memory_space<vmem>>, vector<2x8x8xf32>
    %c0_5 = arith.constant 0 : index
    %c0_6 = arith.constant 0 : index
    %2 = vector.load %arg4[%c0_5, %c0_6] : memref<15x128xf32, #tpu.memory_space<vmem>>, vector<15x128xf32>
    %c0_7 = arith.constant 0 : index
    %c0_8 = arith.constant 0 : index
    %3 = vector.load %arg5[%c0_7, %c0_8] : memref<104x32xf32, #tpu.memory_space<vmem>>, vector<104x32xf32>
    %4 = vector.extract_strided_slice %3 {offsets = [0, 0], sizes = [8, 32], strides = [1, 1]} : vector<104x32xf32> to vector<8x32xf32>
    %5 = vector.extract_strided_slice %3 {offsets = [8, 0], sizes = [32, 32], strides = [1, 1]} : vector<104x32xf32> to vector<32x32xf32>
    %6 = vector.extract_strided_slice %3 {offsets = [40, 0], sizes = [32, 32], strides = [1, 1]} : vector<104x32xf32> to vector<32x32xf32>
    %7 = vector.extract_strided_slice %3 {offsets = [72, 0], sizes = [32, 32], strides = [1, 1]} : vector<104x32xf32> to vector<32x32xf32>
    %8 = tpu.iota {dimensions = array<i32: 0>} : vector<8x8xi32>
    %9 = tpu.iota {dimensions = array<i32: 1>} : vector<8x8xi32>
    %10 = arith.cmpi eq, %8, %9 : vector<8x8xi32>
    %11 = arith.extui %10 : vector<8x8xi1> to vector<8x8xi32>
    %12 = arith.sitofp %11 : vector<8x8xi32> to vector<8x8xf32>
    %13 = vector.shape_cast %12 : vector<8x8xf32> to vector<1x8x8xf32>
    %14 = vector.broadcast %13 : vector<1x8x8xf32> to vector<2x8x8xf32>
    %15 = arith.addf %1, %14 : vector<2x8x8xf32>
    %cst = arith.constant dense<0.000000e+00> : vector<2x8xf32>
    %16 = vector.multi_reduction <add>, %15, %cst [2] : vector<2x8x8xf32> to vector<2x8xf32>
    %17 = vector.shape_cast %16 : vector<2x8xf32> to vector<2x8x1xf32>
    %18 = tpu.reciprocal %17 {approx = true} : vector<2x8x1xf32> -> vector<2x8x1xf32>
    %19 = vector.broadcast %18 : vector<2x8x1xf32> to vector<2x8x8xf32>
    %20 = arith.mulf %15, %19 : vector<2x8x8xf32>
    %21 = vector.extract_strided_slice %2 {offsets = [0, 0], sizes = [1, 32], strides = [1, 1]} : vector<15x128xf32> to vector<1x32xf32>
    %22 = vector.extract_strided_slice %20 {offsets = [0, 0, 0], sizes = [2, 8, 1], strides = [1, 1, 1]} : vector<2x8x8xf32> to vector<2x8x1xf32>
    %23 = vector.extract_strided_slice %0 {offsets = [0, 0, 0], sizes = [2, 1, 8], strides = [1, 1, 1]} : vector<2x8x8xf32> to vector<2x1x8xf32>
    %24 = vector.broadcast %22 : vector<2x8x1xf32> to vector<2x8x8xf32>
    %25 = vector.broadcast %23 : vector<2x1x8xf32> to vector<2x8x8xf32>
    %26 = arith.mulf %24, %25 : vector<2x8x8xf32>
    %27 = vector.extract_strided_slice %20 {offsets = [0, 0, 1], sizes = [2, 8, 1], strides = [1, 1, 1]} : vector<2x8x8xf32> to vector<2x8x1xf32>
    %28 = vector.extract_strided_slice %0 {offsets = [0, 1, 0], sizes = [2, 1, 8], strides = [1, 1, 1]} : vector<2x8x8xf32> to vector<2x1x8xf32>
    %29 = vector.broadcast %27 : vector<2x8x1xf32> to vector<2x8x8xf32>
    %30 = vector.broadcast %28 : vector<2x1x8xf32> to vector<2x8x8xf32>
    %31 = arith.mulf %29, %30 : vector<2x8x8xf32>
    %32 = vector.extract_strided_slice %20 {offsets = [0, 0, 2], sizes = [2, 8, 1], strides = [1, 1, 1]} : vector<2x8x8xf32> to vector<2x8x1xf32>
    %33 = vector.extract_strided_slice %0 {offsets = [0, 2, 0], sizes = [2, 1, 8], strides = [1, 1, 1]} : vector<2x8x8xf32> to vector<2x1x8xf32>
    %34 = vector.broadcast %32 : vector<2x8x1xf32> to vector<2x8x8xf32>
    %35 = vector.broadcast %33 : vector<2x1x8xf32> to vector<2x8x8xf32>
    %36 = arith.mulf %34, %35 : vector<2x8x8xf32>
    %37 = vector.extract_strided_slice %20 {offsets = [0, 0, 3], sizes = [2, 8, 1], strides = [1, 1, 1]} : vector<2x8x8xf32> to vector<2x8x1xf32>
    %38 = vector.extract_strided_slice %0 {offsets = [0, 3, 0], sizes = [2, 1, 8], strides = [1, 1, 1]} : vector<2x8x8xf32> to vector<2x1x8xf32>
    %39 = vector.broadcast %37 : vector<2x8x1xf32> to vector<2x8x8xf32>
    %40 = vector.broadcast %38 : vector<2x1x8xf32> to vector<2x8x8xf32>
    %41 = arith.mulf %39, %40 : vector<2x8x8xf32>
    %42 = vector.extract_strided_slice %20 {offsets = [0, 0, 4], sizes = [2, 8, 1], strides = [1, 1, 1]} : vector<2x8x8xf32> to vector<2x8x1xf32>
    %43 = vector.extract_strided_slice %0 {offsets = [0, 4, 0], sizes = [2, 1, 8], strides = [1, 1, 1]} : vector<2x8x8xf32> to vector<2x1x8xf32>
    %44 = vector.broadcast %42 : vector<2x8x1xf32> to vector<2x8x8xf32>
    %45 = vector.broadcast %43 : vector<2x1x8xf32> to vector<2x8x8xf32>
    %46 = arith.mulf %44, %45 : vector<2x8x8xf32>
    %47 = vector.extract_strided_slice %20 {offsets = [0, 0, 5], sizes = [2, 8, 1], strides = [1, 1, 1]} : vector<2x8x8xf32> to vector<2x8x1xf32>
    %48 = vector.extract_strided_slice %0 {offsets = [0, 5, 0], sizes = [2, 1, 8], strides = [1, 1, 1]} : vector<2x8x8xf32> to vector<2x1x8xf32>
    %49 = vector.broadcast %47 : vector<2x8x1xf32> to vector<2x8x8xf32>
    %50 = vector.broadcast %48 : vector<2x1x8xf32> to vector<2x8x8xf32>
    %51 = arith.mulf %49, %50 : vector<2x8x8xf32>
    %52 = vector.extract_strided_slice %20 {offsets = [0, 0, 6], sizes = [2, 8, 1], strides = [1, 1, 1]} : vector<2x8x8xf32> to vector<2x8x1xf32>
    %53 = vector.extract_strided_slice %0 {offsets = [0, 6, 0], sizes = [2, 1, 8], strides = [1, 1, 1]} : vector<2x8x8xf32> to vector<2x1x8xf32>
    %54 = vector.broadcast %52 : vector<2x8x1xf32> to vector<2x8x8xf32>
    %55 = vector.broadcast %53 : vector<2x1x8xf32> to vector<2x8x8xf32>
    %56 = arith.mulf %54, %55 : vector<2x8x8xf32>
    %57 = vector.extract_strided_slice %20 {offsets = [0, 0, 7], sizes = [2, 8, 1], strides = [1, 1, 1]} : vector<2x8x8xf32> to vector<2x8x1xf32>
    %58 = vector.extract_strided_slice %0 {offsets = [0, 7, 0], sizes = [2, 1, 8], strides = [1, 1, 1]} : vector<2x8x8xf32> to vector<2x1x8xf32>
    %59 = vector.broadcast %57 : vector<2x8x1xf32> to vector<2x8x8xf32>
    %60 = vector.broadcast %58 : vector<2x1x8xf32> to vector<2x8x8xf32>
    %61 = arith.mulf %59, %60 : vector<2x8x8xf32>
    %62 = arith.addf %26, %31 : vector<2x8x8xf32>
    %63 = arith.addf %36, %41 : vector<2x8x8xf32>
    %64 = arith.addf %46, %51 : vector<2x8x8xf32>
    %65 = arith.addf %56, %61 : vector<2x8x8xf32>
    %66 = arith.addf %62, %63 : vector<2x8x8xf32>
    %67 = arith.addf %64, %65 : vector<2x8x8xf32>
    %68 = arith.addf %66, %67 : vector<2x8x8xf32>
    %69 = vector.shape_cast %68 : vector<2x8x8xf32> to vector<16x8xf32>
    %cst_9 = arith.constant dense<0.000000e+00> : vector<16x32xf32>
    %70 = tpu.matmul %69, %4, %cst_9 {dimension_numbers = #tpu.dot_dimension_numbers<[1], [0], [0], [1], [0, 0, 1, 1], [], []>} : vector<16x8xf32>, vector<8x32xf32>, vector<16x32xf32> -> vector<16x32xf32>
    %71 = vector.broadcast %21 : vector<1x32xf32> to vector<16x32xf32>
    %72 = arith.addf %70, %71 : vector<16x32xf32>
    %cst_10 = arith.constant 0.000000e+00 : f32
    %73 = vector.broadcast %cst_10 : f32 to vector<16x32xf32>
    %74 = arith.maximumf %72, %73 : vector<16x32xf32>
    %75 = vector.shape_cast %74 : vector<16x32xf32> to vector<2x8x32xf32>
    %76 = vector.extract_strided_slice %2 {offsets = [1, 0], sizes = [1, 32], strides = [1, 1]} : vector<15x128xf32> to vector<1x32xf32>
    %77 = vector.extract_strided_slice %20 {offsets = [0, 0, 0], sizes = [2, 8, 1], strides = [1, 1, 1]} : vector<2x8x8xf32> to vector<2x8x1xf32>
    %78 = vector.extract_strided_slice %75 {offsets = [0, 0, 0], sizes = [2, 1, 32], strides = [1, 1, 1]} : vector<2x8x32xf32> to vector<2x1x32xf32>
    %79 = vector.broadcast %77 : vector<2x8x1xf32> to vector<2x8x32xf32>
    %80 = vector.broadcast %78 : vector<2x1x32xf32> to vector<2x8x32xf32>
    %81 = arith.mulf %79, %80 : vector<2x8x32xf32>
    %82 = vector.extract_strided_slice %20 {offsets = [0, 0, 1], sizes = [2, 8, 1], strides = [1, 1, 1]} : vector<2x8x8xf32> to vector<2x8x1xf32>
    %83 = vector.extract_strided_slice %75 {offsets = [0, 1, 0], sizes = [2, 1, 32], strides = [1, 1, 1]} : vector<2x8x32xf32> to vector<2x1x32xf32>
    %84 = vector.broadcast %82 : vector<2x8x1xf32> to vector<2x8x32xf32>
    %85 = vector.broadcast %83 : vector<2x1x32xf32> to vector<2x8x32xf32>
    %86 = arith.mulf %84, %85 : vector<2x8x32xf32>
    %87 = vector.extract_strided_slice %20 {offsets = [0, 0, 2], sizes = [2, 8, 1], strides = [1, 1, 1]} : vector<2x8x8xf32> to vector<2x8x1xf32>
    %88 = vector.extract_strided_slice %75 {offsets = [0, 2, 0], sizes = [2, 1, 32], strides = [1, 1, 1]} : vector<2x8x32xf32> to vector<2x1x32xf32>
    %89 = vector.broadcast %87 : vector<2x8x1xf32> to vector<2x8x32xf32>
    %90 = vector.broadcast %88 : vector<2x1x32xf32> to vector<2x8x32xf32>
    %91 = arith.mulf %89, %90 : vector<2x8x32xf32>
    %92 = vector.extract_strided_slice %20 {offsets = [0, 0, 3], sizes = [2, 8, 1], strides = [1, 1, 1]} : vector<2x8x8xf32> to vector<2x8x1xf32>
    %93 = vector.extract_strided_slice %75 {offsets = [0, 3, 0], sizes = [2, 1, 32], strides = [1, 1, 1]} : vector<2x8x32xf32> to vector<2x1x32xf32>
    %94 = vector.broadcast %92 : vector<2x8x1xf32> to vector<2x8x32xf32>
    %95 = vector.broadcast %93 : vector<2x1x32xf32> to vector<2x8x32xf32>
    %96 = arith.mulf %94, %95 : vector<2x8x32xf32>
    %97 = vector.extract_strided_slice %20 {offsets = [0, 0, 4], sizes = [2, 8, 1], strides = [1, 1, 1]} : vector<2x8x8xf32> to vector<2x8x1xf32>
    %98 = vector.extract_strided_slice %75 {offsets = [0, 4, 0], sizes = [2, 1, 32], strides = [1, 1, 1]} : vector<2x8x32xf32> to vector<2x1x32xf32>
    %99 = vector.broadcast %97 : vector<2x8x1xf32> to vector<2x8x32xf32>
    %100 = vector.broadcast %98 : vector<2x1x32xf32> to vector<2x8x32xf32>
    %101 = arith.mulf %99, %100 : vector<2x8x32xf32>
    %102 = vector.extract_strided_slice %20 {offsets = [0, 0, 5], sizes = [2, 8, 1], strides = [1, 1, 1]} : vector<2x8x8xf32> to vector<2x8x1xf32>
    %103 = vector.extract_strided_slice %75 {offsets = [0, 5, 0], sizes = [2, 1, 32], strides = [1, 1, 1]} : vector<2x8x32xf32> to vector<2x1x32xf32>
    %104 = vector.broadcast %102 : vector<2x8x1xf32> to vector<2x8x32xf32>
    %105 = vector.broadcast %103 : vector<2x1x32xf32> to vector<2x8x32xf32>
    %106 = arith.mulf %104, %105 : vector<2x8x32xf32>
    %107 = vector.extract_strided_slice %20 {offsets = [0, 0, 6], sizes = [2, 8, 1], strides = [1, 1, 1]} : vector<2x8x8xf32> to vector<2x8x1xf32>
    %108 = vector.extract_strided_slice %75 {offsets = [0, 6, 0], sizes = [2, 1, 32], strides = [1, 1, 1]} : vector<2x8x32xf32> to vector<2x1x32xf32>
    %109 = vector.broadcast %107 : vector<2x8x1xf32> to vector<2x8x32xf32>
    %110 = vector.broadcast %108 : vector<2x1x32xf32> to vector<2x8x32xf32>
    %111 = arith.mulf %109, %110 : vector<2x8x32xf32>
    %112 = vector.extract_strided_slice %20 {offsets = [0, 0, 7], sizes = [2, 8, 1], strides = [1, 1, 1]} : vector<2x8x8xf32> to vector<2x8x1xf32>
    %113 = vector.extract_strided_slice %75 {offsets = [0, 7, 0], sizes = [2, 1, 32], strides = [1, 1, 1]} : vector<2x8x32xf32> to vector<2x1x32xf32>
    %114 = vector.broadcast %112 : vector<2x8x1xf32> to vector<2x8x32xf32>
    %115 = vector.broadcast %113 : vector<2x1x32xf32> to vector<2x8x32xf32>
    %116 = arith.mulf %114, %115 : vector<2x8x32xf32>
    %117 = arith.addf %81, %86 : vector<2x8x32xf32>
    %118 = arith.addf %91, %96 : vector<2x8x32xf32>
    %119 = arith.addf %101, %106 : vector<2x8x32xf32>
    %120 = arith.addf %111, %116 : vector<2x8x32xf32>
    %121 = arith.addf %117, %118 : vector<2x8x32xf32>
    %122 = arith.addf %119, %120 : vector<2x8x32xf32>
    %123 = arith.addf %121, %122 : vector<2x8x32xf32>
    %124 = vector.shape_cast %123 : vector<2x8x32xf32> to vector<16x32xf32>
    %cst_11 = arith.constant dense<0.000000e+00> : vector<16x32xf32>
    %125 = tpu.matmul %124, %5, %cst_11 {dimension_numbers = #tpu.dot_dimension_numbers<[1], [0], [0], [1], [0, 0, 1, 1], [], []>} : vector<16x32xf32>, vector<32x32xf32>, vector<16x32xf32> -> vector<16x32xf32>
    %126 = vector.broadcast %76 : vector<1x32xf32> to vector<16x32xf32>
    %127 = arith.addf %125, %126 : vector<16x32xf32>
    %cst_12 = arith.constant 0.000000e+00 : f32
    %128 = vector.broadcast %cst_12 : f32 to vector<16x32xf32>
    %129 = arith.maximumf %127, %128 : vector<16x32xf32>
    %130 = vector.shape_cast %129 : vector<16x32xf32> to vector<2x8x32xf32>
    %cst_13 = arith.constant dense<0.000000e+00> : vector<2x32xf32>
    %131 = vector.multi_reduction <add>, %130, %cst_13 [1] : vector<2x8x32xf32> to vector<2x32xf32>
    %cst_14 = arith.constant 8.000000e+00 : f32
    %132 = vector.broadcast %cst_14 : f32 to vector<2x32xf32>
    %133 = arith.divf %131, %132 : vector<2x32xf32>
    %134 = vector.extract_strided_slice %2 {offsets = [2, 0], sizes = [1, 32], strides = [1, 1]} : vector<15x128xf32> to vector<1x32xf32>
    %135 = vector.extract_strided_slice %2 {offsets = [3, 0], sizes = [1, 32], strides = [1, 1]} : vector<15x128xf32> to vector<1x32xf32>
    %cst_15 = arith.constant dense<0.000000e+00> : vector<2xf32>
    %136 = vector.multi_reduction <add>, %133, %cst_15 [1] : vector<2x32xf32> to vector<2xf32>
    %137 = vector.shape_cast %136 : vector<2xf32> to vector<2x1xf32>
    %cst_16 = arith.constant 3.200000e+01 : f32
    %138 = vector.broadcast %cst_16 : f32 to vector<2x1xf32>
    %139 = arith.divf %137, %138 : vector<2x1xf32>
    %140 = arith.mulf %133, %133 : vector<2x32xf32>
    %cst_17 = arith.constant dense<0.000000e+00> : vector<2xf32>
    %141 = vector.multi_reduction <add>, %140, %cst_17 [1] : vector<2x32xf32> to vector<2xf32>
    %142 = vector.shape_cast %141 : vector<2xf32> to vector<2x1xf32>
    %cst_18 = arith.constant 3.200000e+01 : f32
    %143 = vector.broadcast %cst_18 : f32 to vector<2x1xf32>
    %144 = arith.divf %142, %143 : vector<2x1xf32>
    %145 = arith.mulf %139, %139 : vector<2x1xf32>
    %146 = arith.subf %144, %145 : vector<2x1xf32>
    %147 = vector.broadcast %139 : vector<2x1xf32> to vector<2x32xf32>
    %148 = arith.subf %133, %147 : vector<2x32xf32>
    %cst_19 = arith.constant 9.99999974E-6 : f32
    %149 = vector.broadcast %cst_19 : f32 to vector<2x1xf32>
    %150 = arith.addf %146, %149 : vector<2x1xf32>
    %151 = math.rsqrt %150 : vector<2x1xf32>
    %152 = vector.broadcast %151 : vector<2x1xf32> to vector<2x32xf32>
    %153 = arith.mulf %148, %152 : vector<2x32xf32>
    %154 = vector.broadcast %134 : vector<1x32xf32> to vector<2x32xf32>
    %155 = arith.mulf %153, %154 : vector<2x32xf32>
    %156 = vector.broadcast %135 : vector<1x32xf32> to vector<2x32xf32>
    %157 = arith.addf %155, %156 : vector<2x32xf32>
    %cst_20 = arith.constant dense<0.000000e+00> : vector<2x32xf32>
    %158 = tpu.matmul %157, %6, %cst_20 {dimension_numbers = #tpu.dot_dimension_numbers<[1], [0], [0], [1], [0, 0, 1, 1], [], []>} : vector<2x32xf32>, vector<32x32xf32>, vector<2x32xf32> -> vector<2x32xf32>
    %159 = vector.extract_strided_slice %2 {offsets = [4, 0], sizes = [1, 32], strides = [1, 1]} : vector<15x128xf32> to vector<1x32xf32>
    %160 = vector.broadcast %159 : vector<1x32xf32> to vector<2x32xf32>
    %161 = arith.addf %158, %160 : vector<2x32xf32>
    %cst_21 = arith.constant 0.000000e+00 : f32
    %162 = vector.broadcast %cst_21 : f32 to vector<2x32xf32>
    %163 = arith.maximumf %161, %162 : vector<2x32xf32>
    %164 = vector.extract_strided_slice %2 {offsets = [5, 0], sizes = [1, 32], strides = [1, 1]} : vector<15x128xf32> to vector<1x32xf32>
    %165 = vector.extract_strided_slice %2 {offsets = [6, 0], sizes = [1, 32], strides = [1, 1]} : vector<15x128xf32> to vector<1x32xf32>
    %cst_22 = arith.constant dense<0.000000e+00> : vector<2xf32>
    %166 = vector.multi_reduction <add>, %163, %cst_22 [1] : vector<2x32xf32> to vector<2xf32>
    %167 = vector.shape_cast %166 : vector<2xf32> to vector<2x1xf32>
    %cst_23 = arith.constant 3.200000e+01 : f32
    %168 = vector.broadcast %cst_23 : f32 to vector<2x1xf32>
    %169 = arith.divf %167, %168 : vector<2x1xf32>
    %170 = arith.mulf %163, %163 : vector<2x32xf32>
    %cst_24 = arith.constant dense<0.000000e+00> : vector<2xf32>
    %171 = vector.multi_reduction <add>, %170, %cst_24 [1] : vector<2x32xf32> to vector<2xf32>
    %172 = vector.shape_cast %171 : vector<2xf32> to vector<2x1xf32>
    %cst_25 = arith.constant 3.200000e+01 : f32
    %173 = vector.broadcast %cst_25 : f32 to vector<2x1xf32>
    %174 = arith.divf %172, %173 : vector<2x1xf32>
    %175 = arith.mulf %169, %169 : vector<2x1xf32>
    %176 = arith.subf %174, %175 : vector<2x1xf32>
    %177 = vector.broadcast %169 : vector<2x1xf32> to vector<2x32xf32>
    %178 = arith.subf %163, %177 : vector<2x32xf32>
    %cst_26 = arith.constant 9.99999974E-6 : f32
    %179 = vector.broadcast %cst_26 : f32 to vector<2x1xf32>
    %180 = arith.addf %176, %179 : vector<2x1xf32>
    %181 = math.rsqrt %180 : vector<2x1xf32>
    %182 = vector.broadcast %181 : vector<2x1xf32> to vector<2x32xf32>
    %183 = arith.mulf %178, %182 : vector<2x32xf32>
    %184 = vector.broadcast %164 : vector<1x32xf32> to vector<2x32xf32>
    %185 = arith.mulf %183, %184 : vector<2x32xf32>
    %186 = vector.broadcast %165 : vector<1x32xf32> to vector<2x32xf32>
    %187 = arith.addf %185, %186 : vector<2x32xf32>
    %cst_27 = arith.constant dense<0.000000e+00> : vector<2x32xf32>
    %188 = tpu.matmul %187, %7, %cst_27 {dimension_numbers = #tpu.dot_dimension_numbers<[1], [0], [0], [1], [0, 0, 1, 1], [], []>} : vector<2x32xf32>, vector<32x32xf32>, vector<2x32xf32> -> vector<2x32xf32>
    %189 = vector.extract_strided_slice %2 {offsets = [7, 0], sizes = [1, 32], strides = [1, 1]} : vector<15x128xf32> to vector<1x32xf32>
    %190 = vector.broadcast %189 : vector<1x32xf32> to vector<2x32xf32>
    %191 = arith.addf %188, %190 : vector<2x32xf32>
    %cst_28 = arith.constant 0.000000e+00 : f32
    %192 = vector.broadcast %cst_28 : f32 to vector<2x32xf32>
    %193 = arith.maximumf %191, %192 : vector<2x32xf32>
    %194 = vector.extract_strided_slice %2 {offsets = [8, 0], sizes = [1, 32], strides = [1, 1]} : vector<15x128xf32> to vector<1x32xf32>
    %195 = vector.extract_strided_slice %2 {offsets = [9, 0], sizes = [1, 32], strides = [1, 1]} : vector<15x128xf32> to vector<1x32xf32>
    %cst_29 = arith.constant dense<0.000000e+00> : vector<2xf32>
    %196 = vector.multi_reduction <add>, %193, %cst_29 [1] : vector<2x32xf32> to vector<2xf32>
    %197 = vector.shape_cast %196 : vector<2xf32> to vector<2x1xf32>
    %cst_30 = arith.constant 3.200000e+01 : f32
    %198 = vector.broadcast %cst_30 : f32 to vector<2x1xf32>
    %199 = arith.divf %197, %198 : vector<2x1xf32>
    %200 = arith.mulf %193, %193 : vector<2x32xf32>
    %cst_31 = arith.constant dense<0.000000e+00> : vector<2xf32>
    %201 = vector.multi_reduction <add>, %200, %cst_31 [1] : vector<2x32xf32> to vector<2xf32>
    %202 = vector.shape_cast %201 : vector<2xf32> to vector<2x1xf32>
    %cst_32 = arith.constant 3.200000e+01 : f32
    %203 = vector.broadcast %cst_32 : f32 to vector<2x1xf32>
    %204 = arith.divf %202, %203 : vector<2x1xf32>
    %205 = arith.mulf %199, %199 : vector<2x1xf32>
    %206 = arith.subf %204, %205 : vector<2x1xf32>
    %207 = vector.broadcast %199 : vector<2x1xf32> to vector<2x32xf32>
    %208 = arith.subf %193, %207 : vector<2x32xf32>
    %cst_33 = arith.constant 9.99999974E-6 : f32
    %209 = vector.broadcast %cst_33 : f32 to vector<2x1xf32>
    %210 = arith.addf %206, %209 : vector<2x1xf32>
    %211 = math.rsqrt %210 : vector<2x1xf32>
    %212 = vector.broadcast %211 : vector<2x1xf32> to vector<2x32xf32>
    %213 = arith.mulf %208, %212 : vector<2x32xf32>
    %214 = vector.broadcast %194 : vector<1x32xf32> to vector<2x32xf32>
    %215 = arith.mulf %213, %214 : vector<2x32xf32>
    %216 = vector.broadcast %195 : vector<1x32xf32> to vector<2x32xf32>
    %217 = arith.addf %215, %216 : vector<2x32xf32>
    %c0_34 = arith.constant 0 : index
    %c0_35 = arith.constant 0 : index
    %218 = vector.load %arg2[%c0_34, %c0_35] : memref<2x32xf32, #tpu.memory_space<vmem>>, vector<2x32xf32>
    %c0_36 = arith.constant 0 : index
    %c0_37 = arith.constant 0 : index
    %219 = vector.load %arg3[%c0_36, %c0_37] : memref<2x1xf32, #tpu.memory_space<vmem>>, vector<2x1xf32>
    %220 = vector.broadcast %219 : vector<2x1xf32> to vector<2x32xf32>
    %221 = arith.mulf %218, %220 : vector<2x32xf32>
    %222 = tpu.concatenate %217, %221 in 1 : vector<2x32xf32>, vector<2x32xf32> -> vector<2x64xf32>
    %c0_38 = arith.constant 0 : index
    %c0_39 = arith.constant 0 : index
    %223 = vector.load %arg6[%c0_38, %c0_39] : memref<64x128xf32, #tpu.memory_space<vmem>>, vector<64x128xf32>
    %cst_40 = arith.constant dense<0.000000e+00> : vector<2x128xf32>
    %224 = tpu.matmul %222, %223, %cst_40 {dimension_numbers = #tpu.dot_dimension_numbers<[1], [0], [0], [1], [0, 0, 1, 1], [], []>} : vector<2x64xf32>, vector<64x128xf32>, vector<2x128xf32> -> vector<2x128xf32>
    %225 = vector.extract_strided_slice %2 {offsets = [10, 0], sizes = [1, 128], strides = [1, 1]} : vector<15x128xf32> to vector<1x128xf32>
    %226 = vector.broadcast %225 : vector<1x128xf32> to vector<2x128xf32>
    %227 = arith.addf %224, %226 : vector<2x128xf32>
    %228 = vector.extract_strided_slice %227 {offsets = [0, 0], sizes = [2, 64], strides = [1, 1]} : vector<2x128xf32> to vector<2x64xf32>
    %229 = arith.negf %228 : vector<2x64xf32>
    %230 = math.exp %229 : vector<2x64xf32>
    %cst_41 = arith.constant 1.000000e+00 : f32
    %231 = vector.broadcast %cst_41 : f32 to vector<2x64xf32>
    %232 = arith.addf %231, %230 : vector<2x64xf32>
    %233 = arith.divf %231, %232 : vector<2x64xf32>
    %234 = vector.extract_strided_slice %233 {offsets = [0, 0], sizes = [2, 32], strides = [1, 1]} : vector<2x64xf32> to vector<2x32xf32>
    %235 = vector.extract_strided_slice %233 {offsets = [0, 32], sizes = [2, 32], strides = [1, 1]} : vector<2x64xf32> to vector<2x32xf32>
    %236 = vector.extract_strided_slice %227 {offsets = [0, 64], sizes = [2, 32], strides = [1, 1]} : vector<2x128xf32> to vector<2x32xf32>
    %237 = vector.extract_strided_slice %227 {offsets = [0, 96], sizes = [2, 32], strides = [1, 1]} : vector<2x128xf32> to vector<2x32xf32>
    %238 = arith.mulf %234, %237 : vector<2x32xf32>
    %239 = arith.addf %236, %238 : vector<2x32xf32>
    %240 = math.tanh %239 : vector<2x32xf32>
    %cst_42 = arith.constant 1.000000e+00 : f32
    %241 = vector.broadcast %cst_42 : f32 to vector<2x32xf32>
    %242 = arith.subf %241, %235 : vector<2x32xf32>
    %243 = arith.mulf %242, %240 : vector<2x32xf32>
    %244 = arith.mulf %235, %221 : vector<2x32xf32>
    %245 = arith.addf %243, %244 : vector<2x32xf32>
    %c0_43 = arith.constant 0 : index
    %c0_44 = arith.constant 0 : index
    %246 = vector.load %arg8[%c0_43, %c0_44] : memref<2x32xf32, #tpu.memory_space<vmem>>, vector<2x32xf32>
    tpu.vector_store %arg8[%c0_43, %c0_44], %245 {strides = array<i32>} : memref<2x32xf32, #tpu.memory_space<vmem>>, vector<2x32xf32>,
    %247 = vector.extract_strided_slice %2 {offsets = [11, 0], sizes = [1, 32], strides = [1, 1]} : vector<15x128xf32> to vector<1x32xf32>
    %248 = vector.extract_strided_slice %2 {offsets = [12, 0], sizes = [1, 32], strides = [1, 1]} : vector<15x128xf32> to vector<1x32xf32>
    %cst_45 = arith.constant dense<0.000000e+00> : vector<2xf32>
    %249 = vector.multi_reduction <add>, %245, %cst_45 [1] : vector<2x32xf32> to vector<2xf32>
    %250 = vector.shape_cast %249 : vector<2xf32> to vector<2x1xf32>
    %cst_46 = arith.constant 3.200000e+01 : f32
    %251 = vector.broadcast %cst_46 : f32 to vector<2x1xf32>
    %252 = arith.divf %250, %251 : vector<2x1xf32>
    %253 = arith.mulf %245, %245 : vector<2x32xf32>
    %cst_47 = arith.constant dense<0.000000e+00> : vector<2xf32>
    %254 = vector.multi_reduction <add>, %253, %cst_47 [1] : vector<2x32xf32> to vector<2xf32>
    %255 = vector.shape_cast %254 : vector<2xf32> to vector<2x1xf32>
    %cst_48 = arith.constant 3.200000e+01 : f32
    %256 = vector.broadcast %cst_48 : f32 to vector<2x1xf32>
    %257 = arith.divf %255, %256 : vector<2x1xf32>
    %258 = arith.mulf %252, %252 : vector<2x1xf32>
    %259 = arith.subf %257, %258 : vector<2x1xf32>
    %260 = vector.broadcast %252 : vector<2x1xf32> to vector<2x32xf32>
    %261 = arith.subf %245, %260 : vector<2x32xf32>
    %cst_49 = arith.constant 9.99999974E-6 : f32
    %262 = vector.broadcast %cst_49 : f32 to vector<2x1xf32>
    %263 = arith.addf %259, %262 : vector<2x1xf32>
    %264 = math.rsqrt %263 : vector<2x1xf32>
    %265 = vector.broadcast %264 : vector<2x1xf32> to vector<2x32xf32>
    %266 = arith.mulf %261, %265 : vector<2x32xf32>
    %267 = vector.broadcast %247 : vector<1x32xf32> to vector<2x32xf32>
    %268 = arith.mulf %266, %267 : vector<2x32xf32>
    %269 = vector.broadcast %248 : vector<1x32xf32> to vector<2x32xf32>
    %270 = arith.addf %268, %269 : vector<2x32xf32>
    %271 = vector.extract_strided_slice %2 {offsets = [13, 0], sizes = [1, 32], strides = [1, 1]} : vector<15x128xf32> to vector<1x32xf32>
    %272 = vector.extract_strided_slice %2 {offsets = [14, 0], sizes = [1, 1], strides = [1, 1]} : vector<15x128xf32> to vector<1x1xf32>
    %cst_50 = arith.constant dense<0.000000e+00> : vector<1x2xf32>
    %273 = tpu.matmul %271, %270, %cst_50 {dimension_numbers = #tpu.dot_dimension_numbers<[1], [1], [0], [0], [0, 0, 1, 0], [], []>} : vector<1x32xf32>, vector<2x32xf32>, vector<1x2xf32> -> vector<1x2xf32>
    %274 = vector.broadcast %272 : vector<1x1xf32> to vector<1x2xf32>
    %275 = arith.addf %273, %274 : vector<1x2xf32>
    %c0_51 = arith.constant 0 : index
    %c0_52 = arith.constant 0 : index
    %276 = vector.load %arg7[%c0_51, %c0_52] : memref<1x2xf32, #tpu.memory_space<vmem>>, vector<1x2xf32>
    tpu.vector_store %arg7[%c0_51, %c0_52], %275 {strides = array<i32>} : memref<1x2xf32, #tpu.memory_space<vmem>>, vector<1x2xf32>,
    return
  }
}

</mosaic_0001>

<bundles_post_ra>
// kernel: aps_gr_critic_forward.1
= control target key start
LH: loop header
LB: loop body
LE: loop exit
PB: predicated region body
PF: predicated region fallthrough
CT: control target
= control target key end

     0   :  { %v48_v0 = vlaneseq  ;;  %s1037_s0 = inlined_call_operand.vmem [shape: f32[2,8,8], index: 0, kind: input, shape index: {}]   ;;  %s1038_s1 = inlined_call_operand.vmem [shape: f32[2,8,8], index: 1, kind: input, shape index: {}]   ;;  %s1039_s2 = inlined_call_operand.vmem [shape: f32[2,32], index: 2, kind: input, shape index: {}, may-alias: {2,8}]   ;;  %s1040_s3 = inlined_call_operand.vmem [shape: f32[2,1], index: 3, kind: input, shape index: {}]   ;;  %s1041_s4 = inlined_call_operand.vmem [shape: f32[15,128], index: 4, kind: input, shape index: {}]   ;;  %s1042_s5 = inlined_call_operand.vmem [shape: f32[104,32], index: 5, kind: input, shape index: {}]   ;;  %s1043_s6 = inlined_call_operand.vmem [shape: f32[64,128], index: 6, kind: input, shape index: {}]   ;;  %s1044_s7 = inlined_call_operand.hbm [shape: f32[1,2], index: 7, kind: output, shape index: {0}]   ;;  %s1045_s8 = inlined_call_operand.vmem [shape: f32[2,32], index: 8, kind: output, shape index: {1}, may-alias: {2,8}]  }
   0x1   :  { %14 = vsyncpa [#allocation3], 0  ;;  %v31_v3 = vld [vmem:[%s1038_s1] sm:$0xff]  ;;  %v758_v4 = vmov 0.0   ;;  %vm57_vm1 = vcmask 64512   ;;  %v32_v7 = vld [vmem:[%s1038_s1 + $0x8] sm:$0xff] }
   0x2   :  { %v49_v1 = vshrl.u32 %v48_v0, 7  ;;  %v51_v2 = vand.u32 127, %v48_v0  ;;  %v759_v11 = vmov 4   ;;  %v760_v12 = vmov 2   ;;  %v35_v27 = vld [vmem:[%s1042_s5] sm:$0xff]  ;;  %v30_v63 = vld [vmem:[%s1037_s0 + $0x8] sm:$0xff] }
   0x3   :  { %696 = vset.pattern.permute.xlu0 %v759_v11  ;;  %694 = vset.pattern.permute.xlu2 %v760_v12  ;;  %v761_v13 = vmov 0   ;;  %v762_v19 = vmov 3   ;;  %v763_v21 = vmov 7   ;;  %v764_v22 = vmov 1   ;;  %v29_v32 = vld [vmem:[%s1037_s0] sm:$0xff]  ;;  %s769_s17 = smov 32  }
   0x4   :  { %vm52_vm0 = vcmp.eq.s32.totalorder %v49_v1, %v51_v2  ;;  %692 = vset.pattern.permute.xlu1 %v761_v13  ;;  %v765_v23 = vmov 6   ;;  %v766_v24 = vmov 5   ;;  %202 = vmatpush.msra.mxu0 %v35_v27  ;;  %v90_v34 = vperm.slane %v29_v32, 1  ;;  %s653_s16 = sshll.u32 %s1044_s7, 4  ;;  %s654_s16 = int_to_ptr.hbm [resolvable:$true] %s653_s16 }
   0x5   :  { %v666_v5 = vsel %vm52_vm0, 1.0, %v758_v4  ;;  %v114_v35 = vperm.slane %v29_v32, 3  ;;  %v78_v36 = vperm.slane %v29_v32, 0  ;;  %v138_v37 = vperm.slane %v29_v32, 5 }
   0x6   :  { %v55_v6 = vadd.f32 %v666_v5, %v31_v3  ;;  %v56_v9 = vadd.f32 %v666_v5, %v32_v7  ;;  %v102_v38 = vperm.slane %v29_v32, 2  ;;  %v150_v39 = vperm.slane %v29_v32, 6 }
   0x7   :  { %v126_v40 = vperm.slane %v29_v32, 4  ;;  %v162_v42 = vperm.slane %v29_v32, 7  ;;  %v115_v0 = vperm.slane %v30_v63, 3  ;;  %v103_v1 = vperm.slane %v30_v63, 2  ;;  %v39_v32 = vld [vmem:[%s1042_s5 + $0x20] sm:$0xff] }
   0x8   :  { %v58_v8 = vsel %vm57_vm1, %v55_v6, 0.0  ;;  %v61_v10 = vsel %vm57_vm1, %v56_v9, 0.0  ;;  %v151_v2 = vperm.slane %v30_v63, 6  ;;  %v163_v3 = vperm.slane %v30_v63, 7  ;;  %278 = vmatpush.msra.mxu1 %v39_v32 }
   0x9   :  { %59 = vadd.xlane.f32.xlu0 %v58_v8  ;;  %v91_v4 = vperm.slane %v30_v63, 1  ;;  %v79_v7 = vperm.slane %v30_v63, 0  ;;  %v127_v8 = vperm.slane %v30_v63, 4  ;;  %vm259_vm2 = vcmask 261120  }
   0xa   :  { %vm316_vm4 = vcmask 1041409   ;;  %vm319_vm5 = vcmask 254976   ;;  %vm503_vm0 = vcmask 523264  }
  0x11   :  { %62 = vadd.xlane.f32.xlu0 %v61_v10  ;;  %v139_v10 = vperm.slane %v30_v63, 5 }
  0x7c   :  { %v60_v14 = vpop.xlane.xlu0 %59 }
  0x7d   :  { %710 = vrcp.f32 %v60_v14 }
  0x83   :  { %v711_v15 = vpop.eup %710 }
  0x84   :  { %v66_v16 = vmul.f32 %v711_v15, %v55_v6  ;;  %v63_v17 = vpop.xlane.xlu0 %62 }
  0x85   :  { %712 = vrcp.f32 %v63_v17 }
  0x86   :  { %119 = vperm.xlu0 %696, %v66_v16   ;;  %95 = vperm.xlu2 %694, %v66_v16  }
  0x87   :  { %70 = vperm.xlu1 %692, %v66_v16  }
  0x8b   :  { %v713_v18 = vpop.eup %712 }
  0x8c   :  { %v67_v20 = vmul.f32 %v713_v18, %v56_v9 }
  0x8e   :  { %695 = vset.pattern.permute.xlu2 %v762_v19  ;;  %707 = vset.pattern.permute.xlu0 %v763_v21 }
  0x8f   :  { %693 = vset.pattern.permute.xlu1 %v764_v22  ;;  %107 = vperm.xlu2 %695, %v66_v16  }
  0x90   :  { %83 = vperm.xlu1 %693, %v66_v16   ;;  %159 = vperm.xlu0 %707, %v67_v20  }
  0x97   :  { %698 = vset.pattern.permute.xlu2 %v765_v23 }
  0x98   :  { %697 = vset.pattern.permute.xlu1 %v766_v24  ;;  %143 = vperm.xlu2 %698, %v66_v16  }
  0x99   :  { %131 = vperm.xlu1 %697, %v66_v16   ;;  %709 = vset.pattern.permute.xlu0 %v761_v13 }
  0xa0   :  { %700 = vset.pattern.permute.xlu2 %v761_v13 }
  0xa1   :  { %699 = vset.pattern.permute.xlu1 %v763_v21  ;;  %75 = vperm.xlu2 %700, %v67_v20  }
  0xa2   :  { %155 = vperm.xlu1 %699, %v66_v16  }
  0xa9   :  { %702 = vset.pattern.permute.xlu2 %v760_v12 }
  0xaa   :  { %701 = vset.pattern.permute.xlu1 %v764_v22  ;;  %99 = vperm.xlu2 %702, %v67_v20  }
  0xab   :  { %87 = vperm.xlu1 %701, %v67_v20  }
  0xb2   :  { %704 = vset.pattern.permute.xlu2 %v759_v11 }
  0xb3   :  { %703 = vset.pattern.permute.xlu1 %v762_v19  ;;  %123 = vperm.xlu2 %704, %v67_v20  }
  0xb4   :  { %111 = vperm.xlu1 %703, %v67_v20  }
  0xbb   :  { %706 = vset.pattern.permute.xlu2 %v765_v23 }
  0xbc   :  { %705 = vset.pattern.permute.xlu1 %v766_v24  ;;  %147 = vperm.xlu2 %706, %v67_v20  }
  0xbd   :  { %135 = vperm.xlu1 %705, %v67_v20  }
  0xc5   :  { %708 = vset.pattern.permute.xlu1 %v761_v13 }
  0xe0   :  { %v826_v25 = vpop.permute.xlu2 %95 }
  0xe1   :  { %v104_v47 = vmul.f32 %v102_v38, %v826_v25 }
  0xe9   :  { %v833_v28 = vpop.permute.xlu2 %107 }
  0xea   :  { %v116_v44 = vmul.f32 %v114_v35, %v833_v28  ;;  %v37_v35 = vld [vmem:[%s1042_s5 + $0x10] sm:$0xff] }
  0xec   :  { %v168_v53 = vadd.f32 %v116_v44, %v104_v47 }
  0xf2   :  { %v837_v30 = vpop.permute.xlu2 %143 }
  0xf3   :  { %v152_v49 = vmul.f32 %v150_v39, %v837_v30 }
  0xf8   :  { %v847_v43 = vpop.permute.xlu0 %119 }
  0xf9   :  { %v828_v26 = vpop.permute.xlu1 %70  ;;  %v128_v50 = vmul.f32 %v126_v40, %v847_v43 }
  0xfa   :  { %v80_v45 = vmul.f32 %v78_v36, %v828_v26  ;;  %v36_v36 = vld [vmem:[%s1042_s5 + $0x8] sm:$0xff] }
  0xfb   :  { %v844_v33 = vpop.permute.xlu2 %75 }
  0xfc   :  { %v81_v16 = vmul.f32 %v79_v7, %v844_v33 }
 0x102   :  { %v835_v29 = vpop.permute.xlu1 %83  ;;  %v872_v6 = vpop.permute.xlu0 %159 }
 0x103   :  { %v92_v41 = vmul.f32 %v90_v34, %v835_v29  ;;  %v165_v13 = vmul.f32 %v163_v3, %v872_v6  ;;  %v38_v34 = vld [vmem:[%s1042_s5 + $0x18] sm:$0xff] }
 0x104   :  { %v858_v54 = vpop.permute.xlu2 %99  ;;  %279 = vmatpush.msra.mxu1 %v38_v34  ;;  %v767_v34 = vmov 8.0  }
 0x105   :  { %v166_v51 = vadd.f32 %v92_v41, %v80_v45  ;;  %v105_v11 = vmul.f32 %v103_v1, %v858_v54  ;;  %714 = vrcp.f32 %v767_v34 }
 0x106   :  { %280 = vmatpush.msra.mxu1 %v37_v35 }
 0x107   :  { %v174_v57 = vadd.f32 %v168_v53, %v166_v51 }
 0x108   :  { %281 = vmatpush.msra.mxu1 %v36_v36 }
 0x10b   :  { %v839_v31 = vpop.permute.xlu1 %131 }
 0x10c   :  { %v140_v46 = vmul.f32 %v138_v37, %v839_v31  ;;  %v900_v37 = vld [vmem:[%s1041_s4] sm:$0xff] }
 0x10d   :  { %v863_v61 = vpop.permute.xlu2 %123  ;;  %v180_v38 = vperm.slane %v900_v37, 0 }
 0x10e   :  { %v170_v55 = vadd.f32 %v140_v46, %v128_v50  ;;  %v129_v17 = vmul.f32 %v127_v8, %v863_v61 }
 0x114   :  { %v853_v48 = vpop.permute.xlu1 %155 }
 0x115   :  { %v164_v52 = vmul.f32 %v162_v42, %v853_v48 }
 0x116   :  { %v870_v5 = vpop.permute.xlu2 %147 }
 0x117   :  { %v172_v56 = vadd.f32 %v164_v52, %v152_v49  ;;  %v153_v12 = vmul.f32 %v151_v2, %v870_v5 }
 0x119   :  { %v176_v58 = vadd.f32 %v172_v56, %v170_v55  ;;  %v173_v20 = vadd.f32 %v165_v13, %v153_v12 }
 0x11b   :  { %v178_v59 = vadd.f32 %v176_v58, %v174_v57 }
 0x11d   :  { %v860_v60 = vpop.permute.xlu1 %87  ;;  %667 = vmatmul.msk.f32.vlgmr.msra.gmra.mxu0 %vm57_vm1, %v178_v59 }
 0x11e   :  { %v93_v14 = vmul.f32 %v91_v4, %v860_v60 }
 0x120   :  { %v167_v21 = vadd.f32 %v93_v14, %v81_v16 }
 0x126   :  { %v865_v62 = vpop.permute.xlu1 %111 }
 0x127   :  { %v117_v9 = vmul.f32 %v115_v0, %v865_v62 }
 0x129   :  { %v169_v18 = vadd.f32 %v117_v9, %v105_v11 }
 0x12b   :  { %v175_v23 = vadd.f32 %v169_v18, %v167_v21 }
 0x12f   :  { %v879_v15 = vpop.permute.xlu1 %135 }
 0x130   :  { %v141_v19 = vmul.f32 %v139_v10, %v879_v15 }
 0x132   :  { %v171_v22 = vadd.f32 %v141_v19, %v129_v17 }
 0x134   :  { %v177_v24 = vadd.f32 %v173_v20, %v171_v22 }
 0x136   :  { %v179_v27 = vadd.f32 %v177_v24, %v175_v23 }
 0x138   :  { %668 = vmatmul.msk.f32.gmra.mxu0 %vm57_vm1, %v179_v27 }
 0x19a   :  { %v204_v39 = vpop.f32.mrf.mxu0 }
 0x19b   :  { %v205_v40 = vadd.f32 %v204_v39, %v180_v38 }
 0x19d   :  { %v210_v41 = vmax.f32 %v205_v40, 0.0 }
 0x19f   :  { %v212_v42 = vperm.slane %v210_v41, 0  ;;  %v216_v44 = vperm.slane %v210_v41, 1  ;;  %v220_v45 = vperm.slane %v210_v41, 2  ;;  %v224_v46 = vperm.slane %v210_v41, 3 }
 0x1a0   :  { %v228_v47 = vperm.slane %v210_v41, 4  ;;  %v232_v49 = vperm.slane %v210_v41, 5  ;;  %v236_v50 = vperm.slane %v210_v41, 6  ;;  %v240_v51 = vperm.slane %v210_v41, 7 }
 0x1a1   :  { %v214_v52 = vmul.f32 %v212_v42, %v828_v26  ;;  %v218_v53 = vmul.f32 %v216_v44, %v835_v29  ;;  %v222_v55 = vmul.f32 %v220_v45, %v826_v25  ;;  %v226_v56 = vmul.f32 %v224_v46, %v833_v28 }
 0x1a2   :  { %v230_v57 = vmul.f32 %v228_v47, %v847_v43  ;;  %v234_v58 = vmul.f32 %v232_v49, %v839_v31  ;;  %v238_v59 = vmul.f32 %v236_v50, %v837_v30  ;;  %v242_v63 = vmul.f32 %v240_v51, %v853_v48 }
 0x1a3   :  { %v244_v0 = vadd.f32 %v218_v53, %v214_v52  ;;  %v246_v1 = vadd.f32 %v226_v56, %v222_v55 }
 0x1a4   :  { %v248_v2 = vadd.f32 %v234_v58, %v230_v57  ;;  %v250_v3 = vadd.f32 %v242_v63, %v238_v59 }
 0x1a5   :  { %v252_v4 = vadd.f32 %v246_v1, %v244_v0 }
 0x1a6   :  { %v254_v26 = vadd.f32 %v250_v3, %v248_v2 }
 0x1a8   :  { %v256_v29 = vadd.f32 %v254_v26, %v252_v4 }
 0x1aa   :  { %669 = vmatmul.msk.f32.vlgmr.msra.gmra.mxu1 %vm259_vm2, %v256_v29  ;;  %v768_v29 = vmov 32.0  }
 0x1ab   :  { %716 = vrcp.f32 %v768_v29 }
 0x1b5   :  { %v207_v25 = vpop.f32.mrf.mxu0 }
 0x1b6   :  { %v208_v28 = vadd.f32 %v207_v25, %v180_v38 }
 0x1b8   :  { %v211_v7 = vmax.f32 %v208_v28, 0.0 }
 0x1ba   :  { %v213_v43 = vperm.slane %v211_v7, 0  ;;  %v217_v8 = vperm.slane %v211_v7, 1  ;;  %v221_v31 = vperm.slane %v211_v7, 2  ;;  %v225_v9 = vperm.slane %v211_v7, 3 }
 0x1bb   :  { %v229_v30 = vperm.slane %v211_v7, 4  ;;  %v233_v10 = vperm.slane %v211_v7, 5  ;;  %v237_v48 = vperm.slane %v211_v7, 6  ;;  %v241_v11 = vperm.slane %v211_v7, 7 }
 0x1bc   :  { %v215_v12 = vmul.f32 %v213_v43, %v844_v33  ;;  %v219_v13 = vmul.f32 %v217_v8, %v860_v60  ;;  %v223_v14 = vmul.f32 %v221_v31, %v858_v54  ;;  %v227_v16 = vmul.f32 %v225_v9, %v865_v62  ;;  %v43_v31 = vld [vmem:[%s1042_s5 + $0x40] sm:$0xff]  ;;  %v42_v9 = vld [vmem:[%s1042_s5 + $0x38] sm:$0xff] }
 0x1bd   :  { %v231_v17 = vmul.f32 %v229_v30, %v863_v61  ;;  %v235_v18 = vmul.f32 %v233_v10, %v879_v15  ;;  %v239_v19 = vmul.f32 %v237_v48, %v870_v5  ;;  %v243_v20 = vmul.f32 %v241_v11, %v872_v6  ;;  %v715_v6 = vpop.eup %714  ;;  %391 = vmatpush.msra.mxu2 %v43_v31  ;;  %v41_v30 = vld [vmem:[%s1042_s5 + $0x30] sm:$0xff]  ;;  %v40_v48 = vld [vmem:[%s1042_s5 + $0x28] sm:$0xff] }
 0x1be   :  { %v245_v21 = vadd.f32 %v219_v13, %v215_v12  ;;  %v247_v22 = vadd.f32 %v227_v16, %v223_v14  ;;  %v258_v54 = vperm.slane %v900_v37, 1  ;;  %v306_v36 = vmul.f32 8.0, %v715_v6  ;;  %v717_v25 = vpop.eup %716 }
 0x1bf   :  { %v249_v23 = vadd.f32 %v235_v18, %v231_v17  ;;  %v251_v24 = vadd.f32 %v243_v20, %v239_v19  ;;  %vm310_vm3 = vweird.f32 %v715_v6  ;;  %v324_v28 = vmul.f32 32.0, %v717_v25  ;;  %392 = vmatpush.msra.mxu2 %v42_v9 }
 0x1c0   :  { %v253_v27 = vadd.f32 %v247_v22, %v245_v21  ;;  %v307_v41 = vsub.f32 1.0, %v306_v36  ;;  %vm328_vm6 = vweird.f32 %v717_v25 }
 0x1c1   :  { %v255_v33 = vadd.f32 %v251_v24, %v249_v23  ;;  %v325_v7 = vsub.f32 1.0, %v324_v28  ;;  %393 = vmatpush.msra.mxu2 %v41_v30  ;;  %v424_v28 = vperm.slane %v900_v37, 5  ;;  %v481_v30 = vld [vmem:[%s1039_s2] sm:$0x3] }
 0x1c2   :  { %v308_v46 = vmul.f32 %v715_v6, %v307_v41 }
 0x1c3   :  { %v257_v32 = vadd.f32 %v255_v33, %v253_v27  ;;  %v326_v43 = vmul.f32 %v717_v25, %v325_v7  ;;  %394 = vmatpush.msra.mxu2 %v40_v48 }
 0x1c4   :  { %v309_v51 = vadd.f32 %v715_v6, %v308_v46 }
 0x1c5   :  { %670 = vmatmul.msk.f32.gmra.mxu1 %vm259_vm2, %v257_v32  ;;  %v327_v8 = vadd.f32 %v717_v25, %v326_v43 }
 0x1c6   :  { %v311_v56 = vsel %vm310_vm3, %v715_v6, %v309_v51  ;;  %v369_v6 = vperm.slane %v900_v37, 3  ;;  %v45_v51 = vld [vmem:[%s1042_s5 + $0x50] sm:$0xff] }
 0x1c7   :  { %v937_v10 = vsel %vm328_vm6, %v717_v25, %v327_v8  ;;  %v426_v8 = vperm.slane %v900_v37, 6 }
 0x227   :  { %v283_v60 = vpop.f32.mrf.mxu1 }
 0x228   :  { %v284_v62 = vadd.f32 %v283_v60, %v258_v54 }
 0x22a   :  { %v289_v61 = vmax.f32 %v284_v62, 0.0 }
 0x22c   :  { %v291_v5 = vsel %vm259_vm2, %v289_v61, 0.0  ;;  %v366_v61 = vperm.slane %v900_v37, 2 }
 0x22d   :  { %v292_v15 = vrot.slane %v291_v5, 4 }
 0x22f   :  { %v293_v35 = vadd.f32 %v292_v15, %v291_v5 }
 0x231   :  { %v294_v38 = vrot.slane %v293_v35, 2 }
 0x233   :  { %v295_v44 = vadd.f32 %v294_v38, %v293_v35 }
 0x235   :  { %v296_v49 = vrot.slane %v295_v44, 1 }
 0x237   :  { %v297_v55 = vadd.f32 %v296_v49, %v295_v44  ;;  %v47_v49 = vld [vmem:[%s1042_s5 + $0x60] sm:$0xff] }
 0x238   :  { %444 = vmatpush.msra.mxu3 %v47_v49 }
 0x239   :  { %v312_v59 = vmul.f32 %v311_v56, %v297_v55 }
 0x23b   :  { %v331_v1 = vmul.f32 %v312_v59, %v312_v59 }
 0x242   :  { %v286_v39 = vpop.f32.mrf.mxu1 }
 0x243   :  { %v287_v40 = vadd.f32 %v286_v39, %v258_v54 }
 0x245   :  { %v290_v42 = vmax.f32 %v287_v40, 0.0  ;;  %v372_v40 = vperm.slane %v900_v37, 4 }
 0x247   :  { %v298_v45 = vsel %vm259_vm2, %v290_v42, 0.0 }
 0x248   :  { %v299_v47 = vrot.slane %v298_v45, 4 }
 0x24a   :  { %v300_v50 = vadd.f32 %v299_v47, %v298_v45 }
 0x24c   :  { %v301_v52 = vrot.slane %v300_v50, 2 }
 0x24e   :  { %v302_v53 = vadd.f32 %v301_v52, %v300_v50  ;;  %v46_v50 = vld [vmem:[%s1042_s5 + $0x58] sm:$0xff]  ;;  %v44_v52 = vld [vmem:[%s1042_s5 + $0x48] sm:$0xff] }
 0x24f   :  { %445 = vmatpush.msra.mxu3 %v46_v50 }
 0x250   :  { %v303_v57 = vrot.slane %v302_v53, 1 }
 0x251   :  { %446 = vmatpush.msra.mxu3 %v45_v51 }
 0x252   :  { %v304_v58 = vadd.f32 %v303_v57, %v302_v53 }
 0x253   :  { %447 = vmatpush.msra.mxu3 %v44_v52 }
 0x254   :  { %v313_v63 = vmul.f32 %v311_v56, %v304_v58  ;;  %v482_v56 = vld [vmem:[%s1040_s3] sm:$0x3] }
 0x256   :  { %v317_v0 = vsel %vm316_vm4, %v313_v63, %v312_v59  ;;  %v332_v2 = vmul.f32 %v313_v63, %v313_v63 }
 0x257   :  { %v320_v3 = vsel %vm319_vm5, %v317_v0, 0.0 }
 0x258   :  { %321 = vadd.xlane.f32.xlu1 %v320_v3  ;;  %v335_v4 = vsel %vm316_vm4, %v332_v2, %v331_v1 }
 0x259   :  { %v337_v26 = vsel %vm319_vm5, %v335_v4, 0.0 }
 0x25a   :  { %338 = vadd.xlane.f32.xlu2 %v337_v26 }
 0x271   :  { %485 = vperm.xlu1 %708, %v482_v56  }
 0x2cb   :  { %v322_v11 = vpop.xlane.xlu1 %321 }
 0x2cc   :  { %v330_v12 = vmul.f32 %v937_v10, %v322_v11 }
 0x2cd   :  { %v339_v13 = vpop.xlane.xlu2 %338 }
 0x2ce   :  { %v340_v14 = vmul.f32 %v339_v13, %v937_v10  ;;  %v341_v16 = vmul.f32 %v330_v12, %v330_v12  ;;  %v344_v24 = vrot.slane %v330_v12, 1  ;;  %v347_v33 = vsub.f32 %v312_v59, %v330_v12 }
 0x2cf   :  { %v428_v12 = vperm.slane %v900_v37, 7  ;;  %v499_v37 = vld [vmem:[%s1043_s6 + $0x28] sm:$0xff] }
 0x2d0   :  { %v342_v17 = vsub.f32 %v340_v14, %v341_v16  ;;  %v348_v54 = vsub.f32 %v313_v63, %v344_v24  ;;  %v497_v24 = vld [vmem:[%s1043_s6 + $0x18] sm:$0xff] }
 0x2d2   :  { %v349_v18 = vadd.f32 1e-05, %v342_v17 }
 0x2d4   :  { %718 = vrsqrt.f32 %v349_v18  ;;  %vm356_vm8 = vweird.f32 %v349_v18 }
 0x2da   :  { %v719_v19 = vpop.eup %718 }
 0x2db   :  { %v351_v20 = vmul.f32 %v719_v19, %v349_v18  ;;  %vm357_vm7 = vweird.f32 %v719_v19 }
 0x2dc   :  { %vm358_vm9 = vmor %vm356_vm8, %vm357_vm7 }
 0x2dd   :  { %v352_v21 = vmul.f32 %v719_v19, %v351_v20  ;;  %v501_v20 = vld [vmem:[%s1043_s6 + $0x38] sm:$0xff] }
 0x2de   :  { %515 = vmatpush.msrb.mxu0 %v501_v20 }
 0x2df   :  { %v353_v22 = vmul.f32 0.5, %v352_v21  ;;  %v500_v21 = vld [vmem:[%s1043_s6 + $0x30] sm:$0xff] }
 0x2e0   :  { %516 = vmatpush.msrb.mxu0 %v500_v21 }
 0x2e1   :  { %v354_v23 = vsub.f32 1.5, %v353_v22  ;;  %v498_v22 = vld [vmem:[%s1043_s6 + $0x20] sm:$0xff] }
 0x2e2   :  { %517 = vmatpush.msrb.mxu0 %v499_v37 }
 0x2e3   :  { %v355_v27 = vmul.f32 %v719_v19, %v354_v23  ;;  %v486_v48 = vpop.permute.xlu1 %485 }
 0x2e4   :  { %v488_v11 = vmul.f32 %v486_v48, %v481_v30  ;;  %518 = vmatpush.msrb.mxu0 %v498_v22 }
 0x2e5   :  { %v359_v32 = vsel %vm358_vm9, %v719_v19, %v355_v27  ;;  %v496_v27 = vld [vmem:[%s1043_s6 + $0x10] sm:$0xff]  ;;  %vm644_vm9 = vcmask 8192  }
 0x2e6   :  { %v361_v60 = vrot.slane %v359_v32, 1  ;;  %v364_v62 = vmul.f32 %v359_v32, %v347_v33  ;;  %519 = vmatpush.msrb.mxu0 %v497_v24  ;;  %v495_v33 = vld [vmem:[%s1043_s6 + $0x8] sm:$0xff] }
 0x2e8   :  { %v365_v34 = vmul.f32 %v361_v60, %v348_v54  ;;  %v367_v5 = vmul.f32 %v366_v61, %v364_v62  ;;  %520 = vmatpush.msrb.mxu0 %v496_v27  ;;  %v494_v54 = vld [vmem:[%s1043_s6] sm:$0xff]  ;;  %s771_s6 = smov 96  }
 0x2ea   :  { %v368_v15 = vmul.f32 %v366_v61, %v365_v34  ;;  %v370_v36 = vadd.f32 %v369_v6, %v367_v5  ;;  %521 = vmatpush.msrb.mxu0 %v495_v33 }
 0x2ec   :  { %v371_v35 = vadd.f32 %v369_v6, %v368_v15  ;;  %522 = vmatpush.msrb.mxu0 %v494_v54 }
 0x2ee   :  { %v375_v38 = vrot.slane %v371_v35, 7 }
 0x2f0   :  { %v376_v39 = vsel %vm316_vm4, %v375_v38, %v370_v36 }
 0x2f1   :  { %671 = vmatmul.msk.f32.vlgmr.msra.gmra.mxu2 %vm259_vm2, %v376_v39  ;;  %v1007_v39 = vld [vmem:[%s1041_s4 + $0x8] sm:$0x7f]  ;;  %s770_s4 = smov 64  }
 0x2f2   :  { %v502_v52 = vperm.slane %v1007_v39, 2 }
 0x374   :  { %v396_v41 = vpop.f32.mrf.mxu2 }
 0x375   :  { %v397_v42 = vadd.f32 %v396_v41, %v372_v40 }
 0x377   :  { %v399_v44 = vmax.f32 %v397_v42, 0.0  ;;  %v477_v42 = vperm.slane %v1007_v39, 0 }
 0x379   :  { %v400_v45 = vsel %vm319_vm5, %v399_v44, 0.0  ;;  %v404_v46 = vmul.f32 %v399_v44, %v399_v44 }
 0x37a   :  { %401 = vadd.xlane.f32.xlu0 %v400_v45 }
 0x37b   :  { %v405_v47 = vsel %vm319_vm5, %v404_v46, 0.0  ;;  %v479_v46 = vperm.slane %v1007_v39, 1 }
 0x37c   :  { %406 = vadd.xlane.f32.xlu2 %v405_v47 }
 0x38e   :  { %490 = vrot.lane.b32.xlu0 %v488_v11, %s769_s17 }
 0x3ed   :  { %v402_v53 = vpop.xlane.xlu0 %401 }
 0x3ee   :  { %v403_v55 = vmul.f32 %v402_v53, %v937_v10 }
 0x3ef   :  { %v407_v57 = vpop.xlane.xlu2 %406 }
 0x3f0   :  { %v409_v58 = vmul.f32 %v403_v55, %v403_v55  ;;  %v408_v59 = vmul.f32 %v407_v57, %v937_v10  ;;  %v411_v25 = vsub.f32 %v399_v44, %v403_v55 }
 0x3f2   :  { %v410_v63 = vsub.f32 %v408_v59, %v409_v58 }
 0x3f4   :  { %v412_v0 = vadd.f32 1e-05, %v410_v63 }
 0x3f6   :  { %720 = vrsqrt.f32 %v412_v0  ;;  %vm419_vm11 = vweird.f32 %v412_v0 }
 0x3fc   :  { %v721_v1 = vpop.eup %720 }
 0x3fd   :  { %v414_v2 = vmul.f32 %v721_v1, %v412_v0  ;;  %vm420_vm10 = vweird.f32 %v721_v1 }
 0x3fe   :  { %vm421_vm12 = vmor %vm419_vm11, %vm420_vm10 }
 0x3ff   :  { %v415_v3 = vmul.f32 %v721_v1, %v414_v2 }
 0x400   :  { %v491_v49 = vpop.permute.xlu0 %490 }
 0x401   :  { %v416_v4 = vmul.f32 0.5, %v415_v3 }
 0x403   :  { %v417_v26 = vsub.f32 1.5, %v416_v4 }
 0x405   :  { %v418_v29 = vmul.f32 %v721_v1, %v417_v26 }
 0x407   :  { %v422_v7 = vsel %vm421_vm12, %v721_v1, %v418_v29 }
 0x408   :  { %v423_v43 = vmul.f32 %v422_v7, %v411_v25 }
 0x40a   :  { %v425_v31 = vmul.f32 %v424_v28, %v423_v43 }
 0x40c   :  { %v427_v9 = vadd.f32 %v426_v8, %v425_v31 }
 0x40e   :  { %672 = vmatmul.msk.f32.vlgmr.msra.gmra.mxu3 %vm259_vm2, %v427_v9 }
 0x491   :  { %v449_v13 = vpop.f32.mrf.mxu3 }
 0x492   :  { %v450_v14 = vadd.f32 %v449_v13, %v428_v12 }
 0x494   :  { %v452_v16 = vmax.f32 %v450_v14, 0.0  ;;  %v598_v14 = vperm.slane %v1007_v39, 3 }
 0x496   :  { %v453_v17 = vsel %vm319_vm5, %v452_v16, 0.0  ;;  %v457_v18 = vmul.f32 %v452_v16, %v452_v16 }
 0x497   :  { %454 = vadd.xlane.f32.xlu2 %v453_v17 }
 0x498   :  { %v458_v19 = vsel %vm319_vm5, %v457_v18, 0.0 }
 0x49f   :  { %459 = vadd.xlane.f32.xlu2 %v458_v19 }
 0x50a   :  { %v455_v23 = vpop.xlane.xlu2 %454 }
 0x50b   :  { %v456_v32 = vmul.f32 %v455_v23, %v937_v10 }
 0x50d   :  { %v462_v62 = vmul.f32 %v456_v32, %v456_v32  ;;  %v464_v41 = vsub.f32 %v452_v16, %v456_v32  ;;  %v604_v16 = vperm.slane %v1007_v39, 4 }
 0x512   :  { %v460_v60 = vpop.xlane.xlu2 %459 }
 0x513   :  { %v461_v61 = vmul.f32 %v460_v60, %v937_v10 }
 0x515   :  { %v463_v34 = vsub.f32 %v461_v61, %v462_v62 }
 0x517   :  { %v465_v5 = vadd.f32 1e-05, %v463_v34 }
 0x519   :  { %722 = vrsqrt.f32 %v465_v5  ;;  %vm472_vm14 = vweird.f32 %v465_v5 }
 0x51f   :  { %v723_v15 = vpop.eup %722 }
 0x520   :  { %v467_v6 = vmul.f32 %v723_v15, %v465_v5  ;;  %vm473_vm13 = vweird.f32 %v723_v15 }
 0x521   :  { %vm474_vm15 = vmor %vm472_vm14, %vm473_vm13 }
 0x522   :  { %v468_v35 = vmul.f32 %v723_v15, %v467_v6 }
 0x524   :  { %v469_v36 = vmul.f32 0.5, %v468_v35 }
 0x526   :  { %v470_v38 = vsub.f32 1.5, %v469_v36 }
 0x528   :  { %v471_v40 = vmul.f32 %v723_v15, %v470_v38 }
 0x52a   :  { %v475_v44 = vsel %vm474_vm15, %v723_v15, %v471_v40 }
 0x52b   :  { %v476_v45 = vmul.f32 %v475_v44, %v464_v41  ;;  %v614_v41 = vrot.slane %v1007_v39, 5 }
 0x52d   :  { %v478_v47 = vmul.f32 %v477_v42, %v476_v45 }
 0x52f   :  { %v480_v50 = vadd.f32 %v479_v46, %v478_v47 }
 0x531   :  { %v493_v51 = vsel %vm259_vm2, %v480_v50, %v491_v49 }
 0x532   :  { %673 = vmatmul.msk.f32.vlgmr.msrb.gmra.mxu0 %vm503_vm0, %v493_v51 }
 0x5af   :  { %v524_v53 = vpop.f32.mrf.mxu0 }
 0x5b0   :  { %v525_v55 = vadd.f32 %v524_v53, %v502_v52 }
 0x5b2   :  { %547 = vrot.lane.b32.xlu2 %v525_v55, %s769_s17  ;;  %v674_v56 = vmul.f32 -1.442695, %v525_v55 }
 0x5b4   :  { %724 = vpow2.f32 %v674_v56 }
 0x5ba   :  { %v725_v57 = vpop.eup %724 }
 0x5bb   :  { %v530_v58 = vadd.f32 1.0, %v725_v57 }
 0x5bd   :  { %726 = vrcp.f32 %v530_v58  ;;  %v542_v3 = vand.u32 2147483648, %v530_v58  ;;  %vm536_vm3 = vweird.f32 %v530_v58  ;;  %v540_v4 = vand.u32 2147483647, %v530_v58 }
 0x5bf   :  { %v543_v29 = vor.u32 1.1754944e-38, %v542_v3  ;;  %vm541_vm6 = vcmp.eq.f32.partialorder %v540_v4, 8.507059e+37 }
 0x5c3   :  { %v727_v59 = vpop.eup %726 }
 0x5c4   :  { %v532_v63 = vmul.f32 %v727_v59, %v530_v58  ;;  %vm537_vm1 = vweird.f32 %v727_v59 }
 0x5c5   :  { %vm538_vm4 = vmor %vm536_vm3, %vm537_vm1 }
 0x5c6   :  { %v533_v0 = vsub.f32 1.0, %v532_v63 }
 0x5c8   :  { %v534_v1 = vmul.f32 %v727_v59, %v533_v0 }
 0x5ca   :  { %v535_v2 = vadd.f32 %v727_v59, %v534_v1 }
 0x5cc   :  { %v539_v26 = vsel %vm538_vm4, %v727_v59, %v535_v2 }
 0x5cd   :  { %v544_v28 = vsel %vm541_vm6, %v543_v29, %v539_v26 }
 0x5ce   :  { %v557_v9 = vsub.f32 1.0, %v544_v28  ;;  %v563_v48 = vmul.f32 %v544_v28, %v491_v49 }
 0x60c   :  { %v548_v25 = vpop.permute.xlu2 %547 }
 0x60d   :  { %v550_v7 = vmul.f32 %v548_v25, %v544_v28 }
 0x60f   :  { %552 = vrot.lane.b32.xlu1 %v550_v7, %s770_s4 }
 0x681   :  { %v553_v43 = vpop.permute.xlu1 %552 }
 0x682   :  { %v555_v8 = vadd.f32 %v553_v43, %v525_v55 }
 0x684   :  { %728 = vtanh.f32 %v555_v8 }
 0x68a   :  { %v729_v31 = vpop.eup %728 }
 0x68b   :  { %559 = vrot.lane.b32.xlu1 %v729_v31, %s771_s6 }
 0x6fd   :  { %v560_v30 = vpop.permute.xlu1 %559 }
 0x6fe   :  { %v562_v11 = vmul.f32 %v560_v30, %v557_v9 }
 0x700   :  { %v564_v12 = vadd.f32 %v563_v48, %v562_v11 }
 0x702   :  { %566 = vrot.lane.b32.xlu0 %v564_v12, %s771_s6  ;;  %v574_v13 = vmul.f32 %v564_v12, %v564_v12 }
 0x704   :  { %576 = vrot.lane.b32.xlu1 %v574_v13, %s771_s6 }
 0x70c   :  { %600 = vrot.lane.b32.xlu1 %v598_v14, %s769_s17 }
 0x714   :  { %606 = vrot.lane.b32.xlu1 %v604_v16, %s769_s17 }
 0x774   :  { %v567_v17 = vpop.permute.xlu0 %566 }
 0x775   :  { %569 = vst.msk [vmem:[%s1045_s8] sm:$0x3] %vm319_vm5, %v567_v17  ;;  %v570_v18 = vsel %vm319_vm5, %v567_v17, 0.0  ;;  %s772_s8 = smov [#allocation2]  }
 0x776   :  { %571 = vadd.xlane.f32.xlu0 %v570_v18  ;;  %v577_v19 = vpop.permute.xlu1 %576  ;;  %s651_s0 = sshll.u32 %s772_s8, 4  ;;  %s652_s0 = int_to_ptr.vmem [resolvable:$true] %s651_s0 }
 0x777   :  { %v579_v20 = vsel %vm319_vm5, %v577_v19, 0.0 }
 0x778   :  { %580 = vadd.xlane.f32.xlu2 %v579_v20 }
 0x77e   :  { %v601_v62 = vpop.permute.xlu1 %600 }
 0x786   :  { %v607_v36 = vpop.permute.xlu1 %606 }
 0x7e9   :  { %v572_v21 = vpop.xlane.xlu0 %571 }
 0x7ea   :  { %v573_v37 = vmul.f32 %v572_v21, %v937_v10 }
 0x7eb   :  { %v581_v22 = vpop.xlane.xlu2 %580 }
 0x7ec   :  { %v583_v23 = vmul.f32 %v573_v37, %v573_v37  ;;  %v582_v24 = vmul.f32 %v581_v22, %v937_v10  ;;  %v585_v15 = vsub.f32 %v564_v12, %v573_v37 }
 0x7ee   :  { %v584_v27 = vsub.f32 %v582_v24, %v583_v23 }
 0x7f0   :  { %v586_v33 = vadd.f32 1e-05, %v584_v27 }
 0x7f2   :  { %730 = vrsqrt.f32 %v586_v33  ;;  %vm593_vm5 = vweird.f32 %v586_v33 }
 0x7f8   :  { %v731_v32 = vpop.eup %730 }
 0x7f9   :  { %v588_v54 = vmul.f32 %v731_v32, %v586_v33  ;;  %vm594_vm7 = vweird.f32 %v731_v32 }
 0x7fa   :  { %vm595_vm8 = vmor %vm593_vm5, %vm594_vm7 }
 0x7fb   :  { %v589_v60 = vmul.f32 %v731_v32, %v588_v54 }
 0x7fd   :  { %v590_v61 = vmul.f32 0.5, %v589_v60 }
 0x7ff   :  { %v591_v34 = vsub.f32 1.5, %v590_v61 }
 0x801   :  { %v592_v5 = vmul.f32 %v731_v32, %v591_v34 }
 0x803   :  { %v596_v6 = vsel %vm595_vm8, %v731_v32, %v592_v5 }
 0x804   :  { %v597_v35 = vmul.f32 %v596_v6, %v585_v15 }
 0x806   :  { %v603_v38 = vmul.f32 %v601_v62, %v597_v35 }
 0x808   :  { %v609_v40 = vadd.f32 %v607_v36, %v603_v38 }
 0x80a   :  { %616 = vrot.lane.b32.xlu1 %v609_v40, %s771_s6 }
 0x812   :  { %612 = vperm.xlu1 %708, %v1007_v39  }
 0x87c   :  { %v617_v10 = vpop.permute.xlu1 %616 }
 0x87d   :  { %675 = vmatpush.xpose.msk.msrb.mxu2 %vm259_vm2, %v617_v10 }
 0x880   :  { %676 = vmatmul.msk.f32.vlgmr.msrb.gmra.mxu2 %vm259_vm2, %v614_v41 }
 0x884   :  { %v613_v42 = vpop.permute.xlu1 %612 }
 0x885   :  { %v618_v44 = vrot.slane %v613_v42, 6 }
 0x903   :  { %v641_v45 = vpop.f32.mrf.mxu2 }
 0x904   :  { %v642_v46 = vadd.f32 %v641_v45, %v618_v44 }
 0x906   :  { %645 = vst.msk [vmem:[#allocation2] sm:$0x1] %vm644_vm9, %v642_v46 }
 0x907   :  { %656 = dma.vmem_to_hbm [thread:$0]  %s652_s0, 16, %s654_s16, [#allocation3]  }
 0x908   :  { %756 = dma.done.wait [#allocation3], 16  }
 0x909   :  { %757 = vsyncadd [#allocation3], 4294967280 }
 0x90a   :  { %665 = vsyncpa [#allocation3], 1 }

</bundles_post_ra>
